<compile_context>
chip_gen: v7x
topology: tpu7x:2x2x1
jax: 0.10.0
libtpu: 0.0.40
codegen_flags: <defaults>
</compile_context>

<pallas_src>
import functools

import jax
import jax.numpy as jnp
from jax.experimental import pallas as pl
from jax.experimental.pallas import tpu as pltpu


_TARGET_BLOCK_BYTES = 2 << 20  # ~2 MiB input block per grid step


# ---------------------------------------------------------------------------
# Kernels
# ---------------------------------------------------------------------------
def _squeeze_fwd_kernel(x_ref, o_ref, xt_ref, cols_ref, *, f, h, w, cb):
    """Space-to-depth for one (batch, channel-block) slab.

    x_ref:    (1, cb, h, w)
    o_ref:    (1, cb, f*f, h//f, w//f)   sub-plane index k = fi*f + fj
    xt_ref:   VMEM (w, cb*h)             slab with W on the sublane axis
    cols_ref: VMEM (cb*h, w//f)          per-fj column-group scratch
    """
    hf, wf = h // f, w // f
    # One XLU transpose for the whole channel block: W moves to the sublane
    # axis so the fj (width) split becomes a cheap sublane-strided access
    # instead of an unsupported lane-strided one.
    xt_ref[...] = x_ref[0].reshape(cb * h, w).T
    for fj in range(f):
        # Columns fj::f of every plane in the block, back in (cb*h, wf) layout.
        cols_ref[...] = xt_ref[pl.ds(fj, wf, stride=f), :].T
        for fi in range(f):
            # Rows fi::f across the whole block (valid since h % f == 0):
            # one coalesced (cb, hf, wf) store per (fi, fj).  Pure copy.
            o_ref[0, :, fi * f + fj] = cols_ref[
                pl.ds(fi, cb * hf, stride=f), :].reshape(cb, hf, wf)


def _unsqueeze_rev_kernel(x_ref, o_ref, cols_ref, ot_ref, *, f, h, w, cb):
    """Depth-to-space for one (batch, output-channel-block) slab.

    x_ref:    (1, cb, f*f, h//f, w//f)
    o_ref:    (1, cb, h, w)
    cols_ref: VMEM (cb*h, w//f)
    ot_ref:   VMEM (w, cb*h)
    """
    hf, wf = h // f, w // f
    for fj in range(f):
        # Interleave the f sub-planes of this fj along H for the whole block.
        # Contributions are disjoint -> strided stores, no accumulation.
        for fi in range(f):
            cols_ref[pl.ds(fi, cb * hf, stride=f), :] = (
                x_ref[0, :, fi * f + fj].reshape(cb * hf, wf))
        # Scatter this column group into columns fj::f via a sublane-strided
        # store on the W-transposed slab.
        ot_ref[pl.ds(fj, wf, stride=f), :] = cols_ref[...].T
    o_ref[0] = ot_ref[...].T.reshape(cb, h, w)


# ---------------------------------------------------------------------------
# Block sizing helpers
# ---------------------------------------------------------------------------
def _pick_channel_block(n, c, per_channel_bytes, target_bytes):
    """Largest divisor of c whose slab fits the VMEM budget, keeping >=2 grid steps."""
    divisors = [d for d in range(1, c + 1) if c % d == 0]
    fitting = [d for d in divisors if d * per_channel_bytes <= target_bytes]
    if not fitting:
        return 1
    cb = max(fitting)
    # Keep at least 2 grid steps so ("parallel","parallel") can shard across
    # both TensorCores on megacore parts (v7x).
    while cb > 1 and n * (c // cb) < 2:
        smaller = [d for d in fitting if d < cb]
        if not smaller:
            break
        cb = max(smaller)
    return cb


def _vmem_limit(block_in_bytes):
    # ~5.5x the input block is live at once (2x double-buffered in, 2x out,
    # transpose + column scratch); cap at 64 MiB so the setting is also valid
    # on v7x's smaller physical VMEM.
    return int(min(64 << 20, max(32 << 20, 8 * block_in_bytes)))


# ---------------------------------------------------------------------------
# pallas_call wrappers
# ---------------------------------------------------------------------------
def squeeze2d_pallas(x, f, target_block_bytes=_TARGET_BLOCK_BYTES):
    n, c, h, w = x.shape
    hf, wf = h // f, w // f
    isz = x.dtype.itemsize
    cb = _pick_channel_block(n, c, h * w * isz, target_block_bytes)
    block_in_bytes = cb * h * w * isz

    kernel = functools.partial(_squeeze_fwd_kernel, f=f, h=h, w=w, cb=cb)
    grid_spec = pltpu.PrefetchScalarGridSpec(
        num_scalar_prefetch=0,
        grid=(n, c // cb),
        in_specs=[pl.BlockSpec((1, cb, h, w), lambda b, ci: (b, ci, 0, 0))],
        out_specs=pl.BlockSpec((1, cb, f * f, hf, wf),
                               lambda b, ci: (b, ci, 0, 0, 0)),
        scratch_shapes=[
            pltpu.VMEM((w, cb * h), x.dtype),    # W on sublanes
            pltpu.VMEM((cb * h, wf), x.dtype),   # per-fj column group
        ],
    )
    out = pl.pallas_call(
        kernel,
        out_shape=jax.ShapeDtypeStruct((n, c, f * f, hf, wf), x.dtype),
        grid_spec=grid_spec,
        compiler_params=pltpu.CompilerParams(
            dimension_semantics=("parallel", "parallel"),
            vmem_limit_bytes=_vmem_limit(block_in_bytes)),
        cost_estimate=pl.CostEstimate(
            flops=0, transcendentals=0, bytes_accessed=2 * x.size * isz),
    )(x)
    # Free contiguous view back to the PyTorch (n, c*f*f, h/f, w/f) layout.
    return jnp.reshape(out, (n, c * f * f, hf, wf))


def unsqueeze2d_pallas(x, f, target_block_bytes=_TARGET_BLOCK_BYTES):
    n, c_in, hs, ws = x.shape
    c_out = c_in // (f * f)
    h, w = hs * f, ws * f
    isz = x.dtype.itemsize
    cb = _pick_channel_block(n, c_out, h * w * isz, target_block_bytes)
    block_in_bytes = cb * h * w * isz

    kernel = functools.partial(_unsqueeze_rev_kernel, f=f, h=h, w=w, cb=cb)
    x5 = jnp.reshape(x, (n, c_out, f * f, hs, ws))   # free contiguous view
    grid_spec = pltpu.PrefetchScalarGridSpec(
        num_scalar_prefetch=0,
        grid=(n, c_out // cb),
        in_specs=[pl.BlockSpec((1, cb, f * f, hs, ws),
                               lambda b, ci: (b, ci, 0, 0, 0))],
        out_specs=pl.BlockSpec((1, cb, h, w), lambda b, ci: (b, ci, 0, 0)),
        scratch_shapes=[
            pltpu.VMEM((cb * h, ws), x.dtype),   # per-fj column group
            pltpu.VMEM((w, cb * h), x.dtype),    # W on sublanes
        ],
    )
    return pl.pallas_call(
        kernel,
        out_shape=jax.ShapeDtypeStruct((n, c_out, h, w), x.dtype),
        grid_spec=grid_spec,
        compiler_params=pltpu.CompilerParams(
            dimension_semantics=("parallel", "parallel"),
            vmem_limit_bytes=_vmem_limit(block_in_bytes)),
        cost_estimate=pl.CostEstimate(
            flops=0, transcendentals=0, bytes_accessed=2 * x.size * isz),
    )(x5)


# ---------------------------------------------------------------------------
# Module-equivalent wrapper (mirrors the PyTorch forward branching exactly)
# ---------------------------------------------------------------------------
class Squeeze:
    def __init__(self, factor, contiguous=False):
        self.factor = factor
        self.contiguous = contiguous

    def __call__(self, x, logdet=None, reverse=False):
        n, c, h, w = x.shape
        f = self.factor
        if self.contiguous:
            # Pure view re-interpretation (no data movement) -> jnp.reshape glue.
            if not reverse:
                if f == 1:
                    return x, logdet
                assert h % f == 0 and w % f == 0, "h,w not divisible by factor"
                return jnp.reshape(x, (n, c * f * f, h // f, w // f)), logdet
            else:
                if f == 1:
                    return x
                assert c % (f * f) == 0, "channels not divisible by factor squared"
                return jnp.reshape(x, (n, c // (f * f), h * f, w * f))
        if not reverse:
            if f == 1:
                return x, logdet
            assert h % f == 0 and w % f == 0, "h,w not divisible by factor"
            return squeeze2d_pallas(x, f), logdet
        else:
            if f == 1:
                return x
            assert c % (f * f) == 0, "channels not divisible by factor squared"
            return unsqueeze2d_pallas(x, f)


# Pure-JAX reference (matches the PyTorch reshape/permute/reshape path).
def _squeeze_ref(x, f):
    n, c, h, w = x.shape
    x = x.reshape(n, c, h // f, f, w // f, f)
    x = jnp.transpose(x, (0, 1, 3, 5, 2, 4))
    return x.reshape(n, c * f * f, h // f, w // f)


if __name__ == "__main__":
    k0, k1 = jax.random.split(jax.random.PRNGKey(0))
    x = jax.random.normal(k0, (2, 4, 16, 16), dtype=jnp.float32)

    mod = Squeeze(factor=2, contiguous=False)

    # forward (squeeze) — pure permutation, must be bit-exact
    y, logdet = mod(x, logdet=None, reverse=False)
    y = jax.block_until_ready(y)
    assert y.shape == (2, 16, 8, 8), y.shape
    assert logdet is None
    assert jnp.array_equal(y, _squeeze_ref(x, 2)), "forward squeeze mismatch"

    # reverse (unsqueeze) — round trip recovers x exactly
    x_rt = jax.block_until_ready(mod(y, reverse=True))
    assert x_rt.shape == x.shape
    assert jnp.array_equal(x_rt, x), "reverse unsqueeze round-trip mismatch"

    # a second shape exercising the channel-batched slab path
    x2 = jax.random.normal(k1, (2, 8, 32, 32), dtype=jnp.float32)
    y2, _ = mod(x2)
    y2 = jax.block_until_ready(y2)
    assert jnp.array_equal(y2, _squeeze_ref(x2, 2)), "forward mismatch (32x32)"
    x2_rt = jax.block_until_ready(mod(y2, reverse=True))
    assert jnp.array_equal(x2_rt, x2), "round-trip mismatch (32x32)"

    # contiguous branch: pure view reshape semantics
    y_c, _ = Squeeze(factor=2, contiguous=True)(x)
    assert jnp.array_equal(y_c, x.reshape(2, 16, 8, 8))

    print("KERNEL_OK")
</pallas_src>

<mosaic_0001>
module attributes {stable_mosaic.version = 11 : i64} {
  func.func @_squeeze_fwd_kernel(%arg0: i32, %arg1: i32, %arg2: memref<1x4x16x16xf32, #tpu.memory_space<vmem>>, %arg3: memref<1x4x4x8x8xf32, #tpu.memory_space<vmem>>, %arg4: memref<16x64xf32, #tpu.memory_space<vmem>>, %arg5: memref<64x8xf32, #tpu.memory_space<vmem>>) attributes {dimension_semantics = [#tpu.dimension_semantics<parallel>, #tpu.dimension_semantics<parallel>], iteration_bounds = array<i64: 2, 1>, scalar_prefetch = 0 : i64, scratch_operands = 2 : i64, tpu.core_type = #tpu.core_type<tc>, window_params = [{transform_indices = @transform_0, window_bounds = array<i64: 1, 4, 16, 16>}, {transform_indices = @transform_1, window_bounds = array<i64: 1, 4, 4, 8, 8>}]} {
    %c0 = arith.constant 0 : index
    %c0_0 = arith.constant 0 : index
    %c0_1 = arith.constant 0 : index
    %c0_2 = arith.constant 0 : index
    %0 = vector.load %arg2[%c0, %c0_0, %c0_1, %c0_2] : memref<1x4x16x16xf32, #tpu.memory_space<vmem>>, vector<1x4x16x16xf32>
    %1 = vector.shape_cast %0 : vector<1x4x16x16xf32> to vector<4x16x16xf32>
    %2 = vector.shape_cast %1 : vector<4x16x16xf32> to vector<64x16xf32>
    %3 = tpu.transpose %2, [1, 0] : vector<64x16xf32> -> vector<16x64xf32>
    %c0_3 = arith.constant 0 : index
    %c0_4 = arith.constant 0 : index
    %4 = vector.load %arg4[%c0_3, %c0_4] : memref<16x64xf32, #tpu.memory_space<vmem>>, vector<16x64xf32>
    tpu.vector_store %arg4[%c0_3, %c0_4], %3 {strides = array<i32>} : memref<16x64xf32, #tpu.memory_space<vmem>>, vector<16x64xf32>,
    %c0_5 = arith.constant 0 : index
    %c0_6 = arith.constant 0 : index
    %5 = tpu.strided_load %arg4[%c0_5, %c0_6] {strides = array<i32: 2, 1>} : memref<16x64xf32, #tpu.memory_space<vmem>>, vector<8x64xf32>
    %6 = tpu.transpose %5, [1, 0] : vector<8x64xf32> -> vector<64x8xf32>
    %c0_7 = arith.constant 0 : index
    %c0_8 = arith.constant 0 : index
    %7 = vector.load %arg5[%c0_7, %c0_8] : memref<64x8xf32, #tpu.memory_space<vmem>>, vector<64x8xf32>
    tpu.vector_store %arg5[%c0_7, %c0_8], %6 {strides = array<i32>} : memref<64x8xf32, #tpu.memory_space<vmem>>, vector<64x8xf32>,
    %c0_9 = arith.constant 0 : index
    %c0_10 = arith.constant 0 : index
    %8 = tpu.strided_load %arg5[%c0_9, %c0_10] {strides = array<i32: 2, 1>} : memref<64x8xf32, #tpu.memory_space<vmem>>, vector<32x8xf32>
    %9 = vector.shape_cast %8 : vector<32x8xf32> to vector<4x8x8xf32>
    %c0_11 = arith.constant 0 : index
    %c0_12 = arith.constant 0 : index
    %c0_13 = arith.constant 0 : index
    %c0_14 = arith.constant 0 : index
    %c0_15 = arith.constant 0 : index
    %10 = vector.load %arg3[%c0_11, %c0_12, %c0_13, %c0_14, %c0_15] : memref<1x4x4x8x8xf32, #tpu.memory_space<vmem>>, vector<1x4x1x8x8xf32>
    %11 = vector.shape_cast %10 : vector<1x4x1x8x8xf32> to vector<4x8x8xf32>
    %12 = vector.shape_cast %9 : vector<4x8x8xf32> to vector<1x4x1x8x8xf32>
    tpu.vector_store %arg3[%c0_11, %c0_12, %c0_13, %c0_14, %c0_15], %12 {strides = array<i32>} : memref<1x4x4x8x8xf32, #tpu.memory_space<vmem>>, vector<1x4x1x8x8xf32>,
    %c1 = arith.constant 1 : index
    %c0_16 = arith.constant 0 : index
    %13 = tpu.strided_load %arg5[%c1, %c0_16] {strides = array<i32: 2, 1>} : memref<64x8xf32, #tpu.memory_space<vmem>>, vector<32x8xf32>
    %14 = vector.shape_cast %13 : vector<32x8xf32> to vector<4x8x8xf32>
    %c0_17 = arith.constant 0 : index
    %c0_18 = arith.constant 0 : index
    %c2 = arith.constant 2 : index
    %c0_19 = arith.constant 0 : index
    %c0_20 = arith.constant 0 : index
    %15 = vector.load %arg3[%c0_17, %c0_18, %c2, %c0_19, %c0_20] : memref<1x4x4x8x8xf32, #tpu.memory_space<vmem>>, vector<1x4x1x8x8xf32>
    %16 = vector.shape_cast %15 : vector<1x4x1x8x8xf32> to vector<4x8x8xf32>
    %17 = vector.shape_cast %14 : vector<4x8x8xf32> to vector<1x4x1x8x8xf32>
    tpu.vector_store %arg3[%c0_17, %c0_18, %c2, %c0_19, %c0_20], %17 {strides = array<i32>} : memref<1x4x4x8x8xf32, #tpu.memory_space<vmem>>, vector<1x4x1x8x8xf32>,
    %c1_21 = arith.constant 1 : index
    %c0_22 = arith.constant 0 : index
    %18 = tpu.strided_load %arg4[%c1_21, %c0_22] {strides = array<i32: 2, 1>} : memref<16x64xf32, #tpu.memory_space<vmem>>, vector<8x64xf32>
    %19 = tpu.transpose %18, [1, 0] : vector<8x64xf32> -> vector<64x8xf32>
    %c0_23 = arith.constant 0 : index
    %c0_24 = arith.constant 0 : index
    %20 = vector.load %arg5[%c0_23, %c0_24] : memref<64x8xf32, #tpu.memory_space<vmem>>, vector<64x8xf32>
    tpu.vector_store %arg5[%c0_23, %c0_24], %19 {strides = array<i32>} : memref<64x8xf32, #tpu.memory_space<vmem>>, vector<64x8xf32>,
    %c0_25 = arith.constant 0 : index
    %c0_26 = arith.constant 0 : index
    %21 = tpu.strided_load %arg5[%c0_25, %c0_26] {strides = array<i32: 2, 1>} : memref<64x8xf32, #tpu.memory_space<vmem>>, vector<32x8xf32>
    %22 = vector.shape_cast %21 : vector<32x8xf32> to vector<4x8x8xf32>
    %c0_27 = arith.constant 0 : index
    %c0_28 = arith.constant 0 : index
    %c1_29 = arith.constant 1 : index
    %c0_30 = arith.constant 0 : index
    %c0_31 = arith.constant 0 : index
    %23 = vector.load %arg3[%c0_27, %c0_28, %c1_29, %c0_30, %c0_31] : memref<1x4x4x8x8xf32, #tpu.memory_space<vmem>>, vector<1x4x1x8x8xf32>
    %24 = vector.shape_cast %23 : vector<1x4x1x8x8xf32> to vector<4x8x8xf32>
    %25 = vector.shape_cast %22 : vector<4x8x8xf32> to vector<1x4x1x8x8xf32>
    tpu.vector_store %arg3[%c0_27, %c0_28, %c1_29, %c0_30, %c0_31], %25 {strides = array<i32>} : memref<1x4x4x8x8xf32, #tpu.memory_space<vmem>>, vector<1x4x1x8x8xf32>,
    %c1_32 = arith.constant 1 : index
    %c0_33 = arith.constant 0 : index
    %26 = tpu.strided_load %arg5[%c1_32, %c0_33] {strides = array<i32: 2, 1>} : memref<64x8xf32, #tpu.memory_space<vmem>>, vector<32x8xf32>
    %27 = vector.shape_cast %26 : vector<32x8xf32> to vector<4x8x8xf32>
    %c0_34 = arith.constant 0 : index
    %c0_35 = arith.constant 0 : index
    %c3 = arith.constant 3 : index
    %c0_36 = arith.constant 0 : index
    %c0_37 = arith.constant 0 : index
    %28 = vector.load %arg3[%c0_34, %c0_35, %c3, %c0_36, %c0_37] : memref<1x4x4x8x8xf32, #tpu.memory_space<vmem>>, vector<1x4x1x8x8xf32>
    %29 = vector.shape_cast %28 : vector<1x4x1x8x8xf32> to vector<4x8x8xf32>
    %30 = vector.shape_cast %27 : vector<4x8x8xf32> to vector<1x4x1x8x8xf32>
    tpu.vector_store %arg3[%c0_34, %c0_35, %c3, %c0_36, %c0_37], %30 {strides = array<i32>} : memref<1x4x4x8x8xf32, #tpu.memory_space<vmem>>, vector<1x4x1x8x8xf32>,
    return
  }
  func.func @transform_0(%arg0: i32, %arg1: i32) -> (i32, i32, i32, i32) {
    %c0_i32 = arith.constant 0 : i32
    %c0_i32_0 = arith.constant 0 : i32
    %c0_i32_1 = arith.constant 0 : i32
    return %arg0, %arg1, %c0_i32, %c0_i32_0 : i32, i32, i32, i32
  }
  func.func @transform_1(%arg0: i32, %arg1: i32) -> (i32, i32, i32, i32, i32) {
    %c0_i32 = arith.constant 0 : i32
    %c0_i32_0 = arith.constant 0 : i32
    %c0_i32_1 = arith.constant 0 : i32
    %c0_i32_2 = arith.constant 0 : i32
    return %arg0, %arg1, %c0_i32, %c0_i32_0, %c0_i32_1 : i32, i32, i32, i32, i32
  }
}

</mosaic_0001>

<bundles_post_ra>
// kernel: tpu_custom_call.1
= control target key start
LH: loop header
LB: loop body
LE: loop exit
PB: predicated region body
PF: predicated region fallthrough
CT: control target
= control target key end

     0   :  { %6 = vsyncpa [#allocation5], 0  ;;  %s882_s0 = inlined_call_operand.hbm [shape: f32[2,4,16,16], index: 0, kind: input, shape index: {}]   ;;  %s883_s1 = inlined_call_operand.hbm [shape: f32[2,4,4,8,8], index: 1, kind: output, shape index: {}]  }
   0x1   :  { %8 = vsyncpa [#allocation5 + $0x1], 0 }
   0x2   :  { %9 = vsyncpa [#allocation6], 0 }
   0x3   :  { %11 = vsyncpa [#allocation6 + $0x1], 0  ;;  %s655_s6 = smov 0   ;;  %s657_s7 = smov 0  }
   0x4   :  { %s659_s8 = smov 0   ;;  %s661_s9 = smov 0  }
   0x5   :  { %s663_s10 = smov 0   ;;  %s665_s11 = smov 0  }
   0x6 LB: > { %s429_s12 = sadd.s32 4294967295, %s637_s11   ;;  %s430_s13 = sadd.s32 4294967294, %s637_s11   ;;  %s637_s11 = sphi %s665_s11, %s17_s11   ;;  %s633_s10 = sphi %s663_s10, %s898_s10   ;;  %s629_s9 = sphi %s661_s9, %s897_s9   ;;  %s625_s8 = sphi %s659_s8, %s896_s8   ;;  %s621_s7 = sphi %s657_s7, %s895_s7   ;;  %s617_s6 = sphi %s655_s6, %s894_s6  }
   0x7   : > { %s29_s14 = sadd.s32 1, %s633_s10  ;;  %s38_s15 = sadd.s32 1, %s625_s8 }
   0x8   : > { %p31_p0 = scmp.ge.s32.totalorder %s29_s14, 2  ;;  %p45_p1 = scmp.ne.s32.totalorder %s625_s8, %s621_s7 }
   0x9   : > { %p46_p2 = scmp.eq.s32.totalorder %s637_s11, 0  ;;  %p51_p3 = scmp.ne.s32.totalorder %s621_s7, %s617_s6 }
   0xa   : > { %s900_s14 = smov (%p31_p0, %s29_s14), 0  ;;  %p52_p5 = scmp.eq.s32.totalorder %s429_s12, 0 }
   0xb   : > { %p696_p4 = por %p46_p2, %p45_p1  ;;  %s33_s17 = ssub.s32 %s633_s10, %s900_s14 }
   0xc   : > { %p77_p6 = scmp.eq.s32.totalorder %s429_s12, 1  ;;  %p36_p7 = scmp.eq.s32.totalorder %s33_s17, 0 }
   0xd   : > { %p702_p8 = por %p52_p5, %p51_p3  ;;  %p83_p10 = scmp.eq.s32.totalorder %s430_s13, 1 }
   0xe   : > { %p706_p9 = por %p77_p6, %p45_p1  ;;  %p470_p13 = scmp.lt.s32.totalorder %s637_s11, 2 }
   0xf   : > { %s711_s20 = scalar_select %p36_p7, %s625_s8, %s38_s15  }
  0x10   : > { %s887_s19 = scalar_select %p706_p9, 1, 0 }
  0x11   : > { %p713_p11 = por %p83_p10, %p51_p3  ;;  %s103_s22 = sand.u32 1, %s625_s8  }
  0x12   : > { %s433_s23 = sshll.u32 %s103_s22, 6  ;;  %s456_s24 = sshll.u32 %s633_s10, 10 }
  0x13   : > { %s888_s21 = scalar_select %p713_p11, 1, 0 }
  0x14   : > { %s724_s27 = scalar_lea.hbm %s882_s0, %s456_s24  ;;  %s107_s28 = scalar_lea.vmem [#allocation4], %s433_s23 }
  0x15   : > { %s117_s29 = sshll.u32 %s107_s28, 4  ;;  %p730_p0 = pnand %p470_p13, %p696_p4  ;;  %s726_s29 = int_to_ptr.vmem [resolvable:$true] %s117_s29 }
  0x16   : > { %s735_s2 = scalar_lea.sflag [#allocation5], %s103_s22  ;;  %s525_s3 = scalar_lea.hbm %s724_s27, 1024 }
  0x17   : > { %p526_p2 = scmp.ne.s32.totalorder %s724_s27, %s525_s3  ;;  %p527_p3 = pneg %p730_p0 }
  0x18   : > { %s530_s12 = scalar_lea.hbm %s882_s0, 2048  ;;  %p531_p4 = scmp.lt.u32.totalorder %s724_s27, %s882_s0 }
  0x19   : > { %p528_p5 = pnand %p527_p3, %p526_p2  ;;  %p532_p7 = scmp.lt.u32.totalorder %s530_s12, %s525_s3 }
  0x1a   : > { %p534_p13 = scmp.lt.u32.totalorder %s525_s3, %s724_s27 }
  0x1b   : > { %p529_p6 = pneg %p528_p5  ;;  %p533_p10 = por %p532_p7, %p531_p4 }
  0x1d   : > { %p535_p12 = por %p534_p13, %p533_p10 }
  0x1f   : > { %p536_p1 = pnand %p535_p12, %p529_p6 }
  0x21   : > { %539 = shalt.err (!%p536_p1)
}
  0x22   : > { %s540_s16 = scalar_lea.vmem %s726_s29, 1024  ;;  %s639_s17 = smov [#allocation4]  }
  0x23   : > { %p541_p2 = scmp.ne.s32.totalorder %s726_s29, %s540_s16  ;;  %s545_s22 = sshll.u32 %s639_s17, 4  ;;  %s546_s22 = int_to_ptr.vmem [resolvable:$false] %s545_s22 }
  0x24   : > { %s547_s23 = scalar_lea.vmem %s546_s22, 2048  ;;  %p548_p9 = scmp.lt.s32.totalorder %s726_s29, %s546_s22 }
  0x25   : > { %p543_p5 = pnand %p541_p2, %p527_p3  ;;  %p549_p4 = scmp.lt.s32.totalorder %s547_s23, %s540_s16 }
  0x27   : > { %p544_p11 = pneg %p543_p5  ;;  %p550_p7 = por %p549_p4, %p548_p9 }
  0x29   : > { %p551_p10 = pnand %p550_p7, %p544_p11 }
  0x2b   : > { %554 = shalt.err (!%p551_p10)
}
  0x2c   : > { %s640_s24 = smov 128   ;;  %s641_s25 = smov 8  }
  0x2d   : > { %465 = dma.hbm_to_vmem [thread:$0]  (!%p730_p0), %s724_s27, 1024, %s726_s29, %s735_s2, %s640_s24, %s640_s24, %s641_s25  }
  0x2e   : > { %p125_p12 = scmp.lt.s32.totalorder %s637_s11, 3  ;;  %p890_p1 = scmp.ge.s32.totalorder %s637_s11, 1 }
  0x30   : > { %p126_p3 = pnand %p890_p1, %p125_p12 }
  0x31   : > { %s767_s26 = sand.u32 (!%p126_p3), 1, %s621_s7  }
  0x32   : > { %129 = sbr.rel (%p126_p3) target bundleno = 413 (0x19d), region = 24  ;;  %s437_s28 = sshll.u32 (!%p126_p3), %s767_s26, 6 }
  0x33   : > { %s132_s3 = scalar_lea.sflag (!%p126_p3), [#allocation5], %s767_s26  ;;  %s135_s4 = scalar_lea.vmem (!%p126_p3), [#allocation4], %s437_s28 }
  0x39   : > { %608 = dma.done.wait (%p702_p8), %s132_s3, 1024  }
  0x3a   : > { %610 = vsyncadd (%p702_p8), %s132_s3, 4294966272  ;;  %v156_v0 = vld [vmem:[%s135_s4] sm:$0xff]  ;;  %v157_v1 = vld [vmem:[%s135_s4 + $0x8] sm:$0xff]  ;;  %vm196_vm0 = vcmask 523264   ;;  %vm232_vm1 = vcmask 64512   ;;  %s438_s18 = sshll.u32 %s767_s26, 7 }
  0x3b   : > { %164 = vxpose.xlu0.b32.start [1/8] (short) (narrow) %v156_v0, 16  ;;  %v158_v2 = vld [vmem:[%s135_s4 + $0x10] sm:$0xff]  ;;  %v159_v3 = vld [vmem:[%s135_s4 + $0x18] sm:$0xff]  ;;  %v160_v4 = vld [vmem:[%s135_s4 + $0x20] sm:$0xff]  ;;  %s780_s27 = scalar_lea.vmem [#allocation7], %s438_s18  ;;  %s457_s29 = sshll.u32 %s629_s9, 11 }
  0x3c   : > { %v161_v5 = vld [vmem:[%s135_s4 + $0x28] sm:$0xff]  ;;  %v162_v6 = vld [vmem:[%s135_s4 + $0x30] sm:$0xff]  ;;  %v163_v7 = vld [vmem:[%s135_s4 + $0x38] sm:$0xff]  ;;  %s342_s30 = sshll.u32 %s780_s27, 4  ;;  %s827_s12 = scalar_lea.hbm %s883_s1, %s457_s29  ;;  %s829_s30 = int_to_ptr.vmem [resolvable:$true] %s342_s30 }
  0x3d   : > { %s326_s13 = scalar_lea.sflag [#allocation6], %s767_s26  ;;  %s555_s15 = scalar_lea.vmem %s829_s30, 2048 }
  0x3e   : > { %p556_p8 = scmp.ne.s32.totalorder %s829_s30, %s555_s15  ;;  %p891_p9 = scmp.ne.s32.totalorder %s887_s19, 0 }
  0x3f   : > { %165 = vxpose.xlu0.b32.cont [2/8] (short) (narrow) %v157_v1, 16  ;;  %s642_s9 = smov [#allocation7]  }
  0x40   : > { %p557_p11 = pnand %p556_p8, %p891_p9  ;;  %s559_s16 = sshll.u32 %s642_s9, 4  ;;  %s560_s16 = int_to_ptr.vmem [resolvable:$false] %s559_s16 }
  0x41   : > { %s561_s17 = scalar_lea.vmem %s560_s16, 4096  ;;  %p562_p6 = scmp.lt.s32.totalorder %s829_s30, %s560_s16 }
  0x42   : > { %p558_p0 = pneg %p557_p11  ;;  %p563_p13 = scmp.lt.s32.totalorder %s561_s17, %s555_s15 }
  0x43   : > { %166 = vxpose.xlu0.b32.cont [3/8] (short) (narrow) %v158_v2, 16 }
  0x44   : > { %p564_p2 = por %p563_p13, %p562_p6 }
  0x46   : > { %p565_p5 = pnand %p564_p2, %p558_p0 }
  0x47   : > { %167 = vxpose.xlu0.b32.cont [4/8] (short) (narrow) %v159_v3, 16 }
  0x4b   : > { %168 = vxpose.xlu0.b32.cont [5/8] (short) (narrow) %v160_v4, 16 }
  0x4f   : > { %169 = vxpose.xlu0.b32.cont [6/8] (short) (narrow) %v161_v5, 16 }
  0x53   : > { %170 = vxpose.xlu0.b32.cont [7/8] (short) (narrow) %v162_v6, 16 }
  0x57   : > { %171 = vxpose.xlu0.b32.end [8/8] (short) (narrow) %v163_v7, 16 }
  0xbb   : > { %v180_v8 = vpop.trf.xlu0 }
  0xbc   : > { %197 = vst.msk [vmem:[#allocation2] sm:$0xff] %vm196_vm0, %v180_v8 }
  0xbf   : > { %v181_v9 = vpop.trf.xlu0 }
  0xc0   : > { %198 = vst.msk [vmem:[#allocation2 + $0x8] sm:$0xff] %vm196_vm0, %v181_v9 }
  0xc7   : > { %v199_v10 = vld [vmem:[#allocation2] ss:$2 sm:$0xff]  ;;  %v266_v11 = vld [vmem:[#allocation2 + $0x1] ss:$2 sm:$0xff] }
  0xc8   : > { %200 = vxpose.xlu1.b32.start.end [1/1] (short) (narrow) %v199_v10, 64 }
  0xe5   : > { %267 = vxpose.xlu1.b32.start.end [1/1] (short) (narrow) %v266_v11, 64 }
 0x148   : > { %v216_v12 = vpop.trf.xlu1 }
 0x149   : > { %233 = vst.msk [vmem:[#allocation3] sm:$0xff] %vm232_vm1, %v216_v12 }
 0x14c   : > { %v217_v13 = vpop.trf.xlu1 }
 0x14d   : > { %234 = vst.msk [vmem:[#allocation3 + $0x8] sm:$0xff] %vm232_vm1, %v217_v13 }
 0x150   : > { %v218_v14 = vpop.trf.xlu1 }
 0x151   : > { %235 = vst.msk [vmem:[#allocation3 + $0x10] sm:$0xff] %vm232_vm1, %v218_v14 }
 0x154   : > { %v219_v15 = vpop.trf.xlu1  ;;  %v241_v16 = vld [vmem:[#allocation3] ss:$2 sm:$0xff]  ;;  %v253_v17 = vld [vmem:[#allocation3 + $0x1] ss:$2 sm:$0xff] }
 0x155   : > { %236 = vst.msk [vmem:[#allocation3 + $0x18] sm:$0xff] %vm232_vm1, %v219_v15  ;;  %248 = vst.msk [vmem:[%s780_s27] sm:$0xff] %vm232_vm1, %v241_v16 }
 0x156   : > { %439 = vst.msk [vmem:[%s780_s27 + $0x10] sm:$0xff] %vm232_vm1, %v253_v17 }
 0x158   : > { %v220_v18 = vpop.trf.xlu1 }
 0x159   : > { %237 = vst.msk [vmem:[#allocation3 + $0x20] sm:$0xff] %vm232_vm1, %v220_v18 }
 0x15c   : > { %v221_v19 = vpop.trf.xlu1  ;;  %v243_v20 = vld [vmem:[#allocation3 + $0x10] ss:$2 sm:$0xff]  ;;  %v255_v21 = vld [vmem:[#allocation3 + $0x11] ss:$2 sm:$0xff] }
 0x15d   : > { %238 = vst.msk [vmem:[#allocation3 + $0x28] sm:$0xff] %vm232_vm1, %v221_v19  ;;  %249 = vst.msk [vmem:[%s780_s27 + $0x20] sm:$0xff] %vm232_vm1, %v243_v20 }
 0x15e   : > { %440 = vst.msk [vmem:[%s780_s27 + $0x30] sm:$0xff] %vm232_vm1, %v255_v21 }
 0x160   : > { %v222_v22 = vpop.trf.xlu1 }
 0x161   : > { %239 = vst.msk [vmem:[#allocation3 + $0x30] sm:$0xff] %vm232_vm1, %v222_v22 }
 0x164   : > { %v223_v23 = vpop.trf.xlu1  ;;  %v245_v24 = vld [vmem:[#allocation3 + $0x20] ss:$2 sm:$0xff]  ;;  %v257_v25 = vld [vmem:[#allocation3 + $0x21] ss:$2 sm:$0xff] }
 0x165   : > { %240 = vst.msk [vmem:[#allocation3 + $0x38] sm:$0xff] %vm232_vm1, %v223_v23  ;;  %250 = vst.msk [vmem:[%s780_s27 + $0x40] sm:$0xff] %vm232_vm1, %v245_v24 }
 0x166   : > { %441 = vst.msk [vmem:[%s780_s27 + $0x50] sm:$0xff] %vm232_vm1, %v257_v25 }
 0x168   : > { %v283_v26 = vpop.trf.xlu1 }
 0x169   : > { %299 = vst.msk [vmem:[#allocation3] sm:$0xff] %vm232_vm1, %v283_v26 }
 0x16c   : > { %v284_v27 = vpop.trf.xlu1  ;;  %v247_v28 = vld [vmem:[#allocation3 + $0x30] ss:$2 sm:$0xff]  ;;  %v259_v29 = vld [vmem:[#allocation3 + $0x31] ss:$2 sm:$0xff] }
 0x16d   : > { %300 = vst.msk [vmem:[#allocation3 + $0x8] sm:$0xff] %vm232_vm1, %v284_v27  ;;  %251 = vst.msk [vmem:[%s780_s27 + $0x60] sm:$0xff] %vm232_vm1, %v247_v28 }
 0x16e   : > { %442 = vst.msk [vmem:[%s780_s27 + $0x70] sm:$0xff] %vm232_vm1, %v259_v29 }
 0x170   : > { %v285_v30 = vpop.trf.xlu1 }
 0x171   : > { %301 = vst.msk [vmem:[#allocation3 + $0x10] sm:$0xff] %vm232_vm1, %v285_v30 }
 0x174   : > { %v307_v31 = vld [vmem:[#allocation3] ss:$2 sm:$0xff]  ;;  %v316_v32 = vld [vmem:[#allocation3 + $0x1] ss:$2 sm:$0xff]  ;;  %v286_v33 = vpop.trf.xlu1 }
 0x175   : > { %443 = vst.msk [vmem:[%s780_s27 + $0x8] sm:$0xff] %vm232_vm1, %v307_v31  ;;  %447 = vst.msk [vmem:[%s780_s27 + $0x18] sm:$0xff] %vm232_vm1, %v316_v32 }
 0x176   : > { %302 = vst.msk [vmem:[#allocation3 + $0x18] sm:$0xff] %vm232_vm1, %v286_v33 }
 0x178   : > { %v287_v34 = vpop.trf.xlu1 }
 0x179   : > { %303 = vst.msk [vmem:[#allocation3 + $0x20] sm:$0xff] %vm232_vm1, %v287_v34 }
 0x17c   : > { %v288_v37 = vpop.trf.xlu1 }
 0x17d   : > { %v308_v35 = vld [vmem:[#allocation3 + $0x10] ss:$2 sm:$0xff]  ;;  %v317_v36 = vld [vmem:[#allocation3 + $0x11] ss:$2 sm:$0xff]  ;;  %304 = vst.msk [vmem:[#allocation3 + $0x28] sm:$0xff] %vm232_vm1, %v288_v37 }
 0x17e   : > { %444 = vst.msk [vmem:[%s780_s27 + $0x28] sm:$0xff] %vm232_vm1, %v308_v35  ;;  %448 = vst.msk [vmem:[%s780_s27 + $0x38] sm:$0xff] %vm232_vm1, %v317_v36 }
 0x180   : > { %v289_v38 = vpop.trf.xlu1 }
 0x181   : > { %305 = vst.msk [vmem:[#allocation3 + $0x30] sm:$0xff] %vm232_vm1, %v289_v38 }
 0x184   : > { %v309_v39 = vld [vmem:[#allocation3 + $0x20] ss:$2 sm:$0xff]  ;;  %v318_v40 = vld [vmem:[#allocation3 + $0x21] ss:$2 sm:$0xff]  ;;  %v290_v41 = vpop.trf.xlu1 }
 0x185   : > { %445 = vst.msk [vmem:[%s780_s27 + $0x48] sm:$0xff] %vm232_vm1, %v309_v39  ;;  %449 = vst.msk [vmem:[%s780_s27 + $0x58] sm:$0xff] %vm232_vm1, %v318_v40 }
 0x186   : > { %306 = vst.msk [vmem:[#allocation3 + $0x38] sm:$0xff] %vm232_vm1, %v290_v41 }
 0x18d   : > { %v310_v42 = vld [vmem:[#allocation3 + $0x30] ss:$2 sm:$0xff]  ;;  %v319_v43 = vld [vmem:[#allocation3 + $0x31] ss:$2 sm:$0xff] }
 0x18e   : > { %446 = vst.msk [vmem:[%s780_s27 + $0x68] sm:$0xff] %vm232_vm1, %v310_v42  ;;  %450 = vst.msk [vmem:[%s780_s27 + $0x78] sm:$0xff] %vm232_vm1, %v319_v43 }
 0x18f   : > { %568 = shalt.err (!%p565_p5)
}
 0x190   : > { %s569_s22 = scalar_lea.hbm %s827_s12, 2048  ;;  %s573_s25 = scalar_lea.hbm %s883_s1, 4096 }
 0x191   : > { %p570_p4 = scmp.ne.s32.totalorder %s827_s12, %s569_s22  ;;  %p574_p12 = scmp.lt.u32.totalorder %s827_s12, %s883_s1 }
 0x192   : > { %p575_p1 = scmp.lt.u32.totalorder %s573_s25, %s569_s22  ;;  %p577_p8 = scmp.lt.u32.totalorder %s569_s22, %s827_s12 }
 0x193   : > { %p571_p7 = pnand %p570_p4, %p891_p9 }
 0x194   : > { %p576_p3 = por %p575_p1, %p574_p12 }
 0x195   : > { %p572_p10 = pneg %p571_p7 }
 0x196   : > { %p578_p11 = por %p577_p8, %p576_p3 }
 0x198   : > { %p579_p0 = pnand %p578_p11, %p572_p10 }
 0x19a   : > { %582 = shalt.err (!%p579_p0)
}
 0x19b   : > { %s643_s4 = smov 128   ;;  %s644_s18 = smov 8  }
 0x19c   : > { %460 = dma.vmem_to_hbm [thread:$0]  (%p891_p9), %s829_s30, 2048, %s827_s12, %s326_s13, %s643_s4, %s643_s4, %s644_s18  }
 0x19d PF: > { %s357_s27 = sand.u32 1, %s617_s6   ;;  %p892_p6 = scmp.ne.s32.totalorder %s888_s21, 0 }
 0x19e   : > { %p893_p13 = scmp.ge.s32.totalorder %s637_s11, 2  ;;  %s358_s29 = scalar_lea.sflag [#allocation6], %s357_s27 }
 0x1a0   : > { %p467_p2 = pnand %p893_p13, %p892_p6 }
 0x1a2   : > { %612 = dma.done.wait (!%p467_p2), %s358_s29, 2048  }
 0x1a3   : > { %614 = vsyncadd (!%p467_p2), %s358_s29, 4294965248  ;;  %s17_s11 = sadd.s32 1, %s637_s11   ;;  %s894_s6 = smov %s621_s7 }
 0x1a4   : > { %p14_p5 = scmp.ge.s32.totalorder %s17_s11, 4   ;;  %s895_s7 = smov %s625_s8 }
 0x1a5   : > { %s896_s8 = smov %s711_s20  ;;  %s897_s9 = smov %s633_s10 }
 0x1a6   : > { %s898_s10 = smov %s900_s14  ;;  %16 = sbr.rel (!%p14_p5) target bundleno = 6 (0x6), region = 80 }
 0x1ad   :  { %363 = vsyncpa [#allocation5], 1 }
 0x1ae   :  { %365 = vsyncpa [#allocation5 + $0x1], 1 }
 0x1af   :  { %366 = vsyncpa [#allocation6], 1 }
 0x1b0   :  { %368 = vsyncpa [#allocation6 + $0x1], 1 }

</bundles_post_ra>
